<compile_context>
chip_gen: v5e
topology: v5e:2x2
jax: 0.10.0
libtpu: 0.0.40
codegen_flags: <defaults>
</compile_context>

<pallas_src>
import functools

import jax
import jax.numpy as jnp
from jax.experimental import pallas as pl
from jax.experimental.pallas import tpu as pltpu


MXU_DTYPE = jnp.bfloat16     # bf16 MXU inputs, f32 accumulation (all TPU gens)
IN_EPS = 1e-5                # PyTorch InstanceNorm2d default


def _round_up(x, m):
    return (x + m - 1) // m * m


# ----------------------------------------------------------------------------
# Fused Pallas kernel: (im2col GEMM) + InstanceNorm(affine) + ReLU
# ----------------------------------------------------------------------------

def _fused_conv_in_relu_kernel(a_ref, w_ref, g_ref, be_ref, o_ref, *, eps, inv_hw):
    # a_ref  : (Kp, HW)  bf16  im2col patches for ONE image (HW on the lane axis)
    # w_ref  : (CP, Kp)  bf16  conv weights (Cout padded to sublane multiple)
    # g_ref, be_ref : (CP, 1) f32  InstanceNorm gamma / beta
    # o_ref  : (CP, HW)  bf16  fused output for ONE image (already channel-major/NCHW)
    #
    # The Conv2d bias is intentionally absent: InstanceNorm removes the per-channel,
    # per-image mean, so a per-channel bias cancels exactly.
    acc = jnp.dot(w_ref[...], a_ref[...], preferred_element_type=jnp.float32)  # (CP, HW)

    # One-pass InstanceNorm stats (biased variance, matching PyTorch):
    # single sweep for sum and sum-of-squares, var = E[x^2] - m^2 (clamped).
    s = jnp.sum(acc, axis=1, keepdims=True)
    s2 = jnp.sum(acc * acc, axis=1, keepdims=True)
    m = s * inv_hw
    v = jnp.maximum(s2 * inv_hw - m * m, 0.0)
    scale = g_ref[...] * jax.lax.rsqrt(v + eps)          # (CP, 1)
    shift = be_ref[...] - m * scale

    o_ref[...] = jnp.maximum(acc * scale + shift, 0.0).astype(o_ref.dtype)   # ReLU


# ----------------------------------------------------------------------------
# Parameter construction (deterministic, PyTorch-layout weights)
# ----------------------------------------------------------------------------

def init_sample_block(key, channels_in, channels_out, size, dil):
    k = 3
    kw_key, kb_key = jax.random.split(key)
    fan_in = channels_in * k * k
    bound = 1.0 / float(fan_in) ** 0.5

    if size == "DOWN":
        # PyTorch Conv2d weight layout: (Cout, Cin, kh, kw) -> HWIO.
        w_pt = jax.random.uniform(kw_key, (channels_out, channels_in, k, k),
                                  jnp.float32, -bound, bound)
        w_hwio = jnp.transpose(w_pt, (2, 3, 1, 0))
    elif size == "UP":
        # PyTorch ConvTranspose2d weight layout: (Cin, Cout, kh, kw).
        # Stride-1 transpose conv == correlation with the spatially-flipped,
        # in/out-swapped weight at padding = dil*(k-1) - dil = dil.
        w_pt = jax.random.uniform(kw_key, (channels_in, channels_out, k, k),
                                  jnp.float32, -bound, bound)
        w_hwio = jnp.transpose(w_pt[:, :, ::-1, ::-1], (2, 3, 0, 1))
    else:
        raise ValueError(size)

    # Bias is kept as a parameter for layout fidelity with PyTorch, but it never
    # reaches the kernel: InstanceNorm cancels a per-channel bias exactly.
    bias = jax.random.uniform(kb_key, (channels_out,), jnp.float32, -bound, bound)
    gamma = jnp.ones((channels_out,), jnp.float32)     # InstanceNorm2d affine init
    beta = jnp.zeros((channels_out,), jnp.float32)
    return {"w_hwio": w_hwio, "bias": bias, "gamma": gamma, "beta": beta,
            "dil": int(dil), "cin": int(channels_in), "cout": int(channels_out)}


# ----------------------------------------------------------------------------
# Forward pass (JAX glue around the fused kernel)
# ----------------------------------------------------------------------------

def _im2col_nchw(x_padded, ksize, dil):
    """x_padded: (N, C, Hp, Wp) -> patches (N, ksize*ksize*C, H*W), tap-major rows."""
    N, C, Hp, Wp = x_padded.shape
    H = Hp - (ksize - 1) * dil
    W = Wp - (ksize - 1) * dil
    taps = []
    for kh in range(ksize):
        for kw in range(ksize):
            taps.append(x_padded[:, :, kh * dil:kh * dil + H,
                                 kw * dil:kw * dil + W].reshape(N, C, H * W))
    return jnp.concatenate(taps, axis=1), H, W           # (N, 9*C, HW)


def sample_block_apply(params, x_nchw, out_dtype=jnp.bfloat16):
    dil, cin, cout = params["dil"], params["cin"], params["cout"]
    N, C, H, W = x_nchw.shape
    assert C == cin

    # Stay in NCHW throughout: pad spatially, build tap-major patches (N, 9*Cin, HW).
    x = jnp.pad(x_nchw.astype(jnp.float32),
                ((0, 0), (0, 0), (dil, dil), (dil, dil)))
    patches, Ho, Wo = _im2col_nchw(x, 3, dil)
    assert (Ho, Wo) == (H, W)
    HW = H * W                                            # 256 here: multiple of 128
    # (lane-dense stores; non-multiples still compile via full-extent blocks)

    K = 9 * cin
    Kp = _round_up(K, 16)                                 # clean bf16 sublane packing
    cp_align = 16 if out_dtype == jnp.bfloat16 else 8     # bf16 packs 2 rows/sublane
    CP = _round_up(cout, cp_align)

    a = jnp.pad(patches, ((0, 0), (0, Kp - K), (0, 0))).astype(MXU_DTYPE)
    wmat = params["w_hwio"].reshape(K, cout).T            # (cout, K), tap-major cols
    wmat = jnp.pad(wmat, ((0, CP - cout), (0, Kp - K))).astype(MXU_DTYPE)
    gamma = jnp.pad(params["gamma"], (0, CP - cout)).reshape(CP, 1)
    beta = jnp.pad(params["beta"], (0, CP - cout)).reshape(CP, 1)

    kern = functools.partial(_fused_conv_in_relu_kernel, eps=IN_EPS, inv_hw=1.0 / HW)
    out = pl.pallas_call(
        kern,
        out_shape=jax.ShapeDtypeStruct((N, CP, HW), out_dtype),
        grid=(N,),
        in_specs=[
            pl.BlockSpec((None, Kp, HW), lambda n: (n, 0, 0)),   # per-image patches
            pl.BlockSpec((CP, Kp), lambda n: (0, 0)),            # weights (resident)
            pl.BlockSpec((CP, 1), lambda n: (0, 0)),             # gamma
            pl.BlockSpec((CP, 1), lambda n: (0, 0)),             # beta
        ],
        out_specs=pl.BlockSpec((None, CP, HW), lambda n: (n, 0, 0)),
        compiler_params=pltpu.CompilerParams(
            dimension_semantics=("parallel",)),
    )(a, wmat, gamma, beta)

    # (N, CP, HW) -> (N, Cout, H, W): already channel-major, just reshape + slice.
    return out.reshape(N, CP, H, W)[:, :cout]


# ----------------------------------------------------------------------------
# Pure-XLA reference (f32, including the bias that InstanceNorm cancels)
# ----------------------------------------------------------------------------

def _reference_forward(params, x_nchw):
    dil = params["dil"]
    w_hwio = params["w_hwio"].astype(jnp.float32)
    x = jnp.transpose(x_nchw, (0, 2, 3, 1)).astype(jnp.float32)
    y = jax.lax.conv_general_dilated(
        x, w_hwio, window_strides=(1, 1),
        padding=((dil, dil), (dil, dil)), rhs_dilation=(dil, dil),
        dimension_numbers=("NHWC", "HWIO", "NHWC"),
        precision=jax.lax.Precision.HIGHEST)
    y = y + params["bias"].reshape(1, 1, 1, -1)
    m = jnp.mean(y, axis=(1, 2), keepdims=True)
    v = jnp.mean((y - m) ** 2, axis=(1, 2), keepdims=True)
    y = (y - m) * jax.lax.rsqrt(v + IN_EPS)
    y = y * params["gamma"].reshape(1, 1, 1, -1) + params["beta"].reshape(1, 1, 1, -1)
    y = jnp.maximum(y, 0.0)
    return jnp.transpose(y, (0, 3, 1, 2))


# ----------------------------------------------------------------------------

if __name__ == "__main__":
    key = jax.random.PRNGKey(0)
    kx, kd, ku = jax.random.split(key, 3)

    x = jax.random.normal(kx, (2, 4, 16, 16), jnp.float32)   # NCHW input

    down = init_sample_block(kd, 4, 8, "DOWN", dil=2)
    up = init_sample_block(ku, 4, 8, "UP", dil=1)

    f_down = jax.jit(functools.partial(sample_block_apply, down))
    f_up = jax.jit(functools.partial(sample_block_apply, up))

    y_down = jax.block_until_ready(f_down(x))
    y_up = jax.block_until_ready(f_up(x))

    assert y_down.shape == (2, 8, 16, 16), y_down.shape
    assert y_up.shape == (2, 8, 16, 16), y_up.shape
    assert bool(jnp.all(jnp.isfinite(y_down)))
    assert bool(jnp.all(jnp.isfinite(y_up)))

    # Cross-check the fused bf16-MXU / bf16-store kernel against a pure-f32 XLA reference.
    err = max(
        float(jnp.max(jnp.abs(y_down.astype(jnp.float32) - _reference_forward(down, x)))),
        float(jnp.max(jnp.abs(y_up.astype(jnp.float32) - _reference_forward(up, x)))),
    )
    assert err < 1e-1, f"max abs error vs reference: {err}"

    print("KERNEL_OK")
</pallas_src>

<mosaic_0001>
module attributes {stable_mosaic.version = 11 : i64} {
  func.func @_fused_conv_in_relu_kernel(%arg0: i32, %arg1: memref<1x48x256xbf16, #tpu.memory_space<vmem>>, %arg2: memref<16x48xbf16, #tpu.memory_space<vmem>>, %arg3: memref<16x1xf32, #tpu.memory_space<vmem>>, %arg4: memref<16x1xf32, #tpu.memory_space<vmem>>, %arg5: memref<1x16x256xbf16, #tpu.memory_space<vmem>>) attributes {dimension_semantics = [#tpu.dimension_semantics<parallel>], iteration_bounds = array<i64: 2>, scalar_prefetch = 0 : i64, scratch_operands = 0 : i64, tpu.core_type = #tpu.core_type<tc>, window_params = [{transform_indices = @transform_0, window_bounds = array<i64: 1, 48, 256>}, {pipeline_mode = #tpu.pipeline_mode<synchronous>, transform_indices = @transform_1, window_bounds = array<i64: 16, 48>}, {pipeline_mode = #tpu.pipeline_mode<synchronous>, transform_indices = @transform_2, window_bounds = array<i64: 16, 1>}, {pipeline_mode = #tpu.pipeline_mode<synchronous>, transform_indices = @transform_3, window_bounds = array<i64: 16, 1>}, {transform_indices = @transform_4, window_bounds = array<i64: 1, 16, 256>}]} {
    %c0 = arith.constant 0 : index
    %c0_0 = arith.constant 0 : index
    %0 = vector.load %arg2[%c0, %c0_0] : memref<16x48xbf16, #tpu.memory_space<vmem>>, vector<16x48xbf16>
    %c0_1 = arith.constant 0 : index
    %c0_2 = arith.constant 0 : index
    %c0_3 = arith.constant 0 : index
    %1 = vector.load %arg1[%c0_1, %c0_2, %c0_3] : memref<1x48x256xbf16, #tpu.memory_space<vmem>>, vector<1x48x256xbf16>
    %2 = vector.shape_cast %1 : vector<1x48x256xbf16> to vector<48x256xbf16>
    %cst = arith.constant dense<0.000000e+00> : vector<16x256xf32>
    %3 = tpu.matmul %0, %2, %cst {dimension_numbers = #tpu.dot_dimension_numbers<[1], [0], [0], [1], [0, 0, 1, 1], [], []>} : vector<16x48xbf16>, vector<48x256xbf16>, vector<16x256xf32> -> vector<16x256xf32>
    %cst_4 = arith.constant dense<0.000000e+00> : vector<16xf32>
    %4 = vector.multi_reduction <add>, %3, %cst_4 [1] : vector<16x256xf32> to vector<16xf32>
    %5 = vector.shape_cast %4 : vector<16xf32> to vector<16x1xf32>
    %6 = arith.mulf %3, %3 : vector<16x256xf32>
    %cst_5 = arith.constant dense<0.000000e+00> : vector<16xf32>
    %7 = vector.multi_reduction <add>, %6, %cst_5 [1] : vector<16x256xf32> to vector<16xf32>
    %8 = vector.shape_cast %7 : vector<16xf32> to vector<16x1xf32>
    %cst_6 = arith.constant 3.906250e-03 : f32
    %9 = vector.broadcast %cst_6 : f32 to vector<16x1xf32>
    %10 = arith.mulf %5, %9 : vector<16x1xf32>
    %cst_7 = arith.constant 3.906250e-03 : f32
    %11 = vector.broadcast %cst_7 : f32 to vector<16x1xf32>
    %12 = arith.mulf %8, %11 : vector<16x1xf32>
    %13 = arith.mulf %10, %10 : vector<16x1xf32>
    %14 = arith.subf %12, %13 : vector<16x1xf32>
    %cst_8 = arith.constant 0.000000e+00 : f32
    %15 = vector.broadcast %cst_8 : f32 to vector<16x1xf32>
    %16 = arith.maximumf %14, %15 : vector<16x1xf32>
    %c0_9 = arith.constant 0 : index
    %c0_10 = arith.constant 0 : index
    %17 = vector.load %arg3[%c0_9, %c0_10] : memref<16x1xf32, #tpu.memory_space<vmem>>, vector<16x1xf32>
    %cst_11 = arith.constant 9.99999974E-6 : f32
    %18 = vector.broadcast %cst_11 : f32 to vector<16x1xf32>
    %19 = arith.addf %16, %18 : vector<16x1xf32>
    %20 = math.rsqrt %19 : vector<16x1xf32>
    %21 = arith.mulf %17, %20 : vector<16x1xf32>
    %c0_12 = arith.constant 0 : index
    %c0_13 = arith.constant 0 : index
    %22 = vector.load %arg4[%c0_12, %c0_13] : memref<16x1xf32, #tpu.memory_space<vmem>>, vector<16x1xf32>
    %23 = arith.mulf %10, %21 : vector<16x1xf32>
    %24 = arith.subf %22, %23 : vector<16x1xf32>
    %25 = vector.broadcast %21 : vector<16x1xf32> to vector<16x256xf32>
    %26 = arith.mulf %3, %25 : vector<16x256xf32>
    %27 = vector.broadcast %24 : vector<16x1xf32> to vector<16x256xf32>
    %28 = arith.addf %26, %27 : vector<16x256xf32>
    %cst_14 = arith.constant 0.000000e+00 : f32
    %29 = vector.broadcast %cst_14 : f32 to vector<16x256xf32>
    %30 = arith.maximumf %28, %29 : vector<16x256xf32>
    %31 = arith.truncf %30 : vector<16x256xf32> to vector<16x256xbf16>
    %c0_15 = arith.constant 0 : index
    %c0_16 = arith.constant 0 : index
    %c0_17 = arith.constant 0 : index
    %32 = vector.load %arg5[%c0_15, %c0_16, %c0_17] : memref<1x16x256xbf16, #tpu.memory_space<vmem>>, vector<1x16x256xbf16>
    %33 = vector.shape_cast %32 : vector<1x16x256xbf16> to vector<16x256xbf16>
    %34 = vector.shape_cast %31 : vector<16x256xbf16> to vector<1x16x256xbf16>
    tpu.vector_store %arg5[%c0_15, %c0_16, %c0_17], %34 {strides = array<i32>} : memref<1x16x256xbf16, #tpu.memory_space<vmem>>, vector<1x16x256xbf16>,
    return
  }
  func.func @transform_0(%arg0: i32) -> (i32, i32, i32) {
    %c0_i32 = arith.constant 0 : i32
    %c0_i32_0 = arith.constant 0 : i32
    %c0_i32_1 = arith.constant 0 : i32
    return %arg0, %c0_i32, %c0_i32_0 : i32, i32, i32
  }
  func.func @transform_1(%arg0: i32) -> (i32, i32) {
    %c0_i32 = arith.constant 0 : i32
    %c0_i32_0 = arith.constant 0 : i32
    %c0_i32_1 = arith.constant 0 : i32
    return %c0_i32, %c0_i32_0 : i32, i32
  }
  func.func @transform_2(%arg0: i32) -> (i32, i32) {
    %c0_i32 = arith.constant 0 : i32
    %c0_i32_0 = arith.constant 0 : i32
    %c0_i32_1 = arith.constant 0 : i32
    return %c0_i32, %c0_i32_0 : i32, i32
  }
  func.func @transform_3(%arg0: i32) -> (i32, i32) {
    %c0_i32 = arith.constant 0 : i32
    %c0_i32_0 = arith.constant 0 : i32
    %c0_i32_1 = arith.constant 0 : i32
    return %c0_i32, %c0_i32_0 : i32, i32
  }
  func.func @transform_4(%arg0: i32) -> (i32, i32, i32) {
    %c0_i32 = arith.constant 0 : i32
    %c0_i32_0 = arith.constant 0 : i32
    %c0_i32_1 = arith.constant 0 : i32
    return %arg0, %c0_i32, %c0_i32_0 : i32, i32, i32
  }
}

</mosaic_0001>

<bundles_post_ra>
// kernel: sample_block_apply.1
= control target key start
LH: loop header
LB: loop body
LE: loop exit
PB: predicated region body
PF: predicated region fallthrough
CT: control target
= control target key end

     0   :  { %s522_s15 = smov 0   ;;  %s582_s0 = inlined_call_operand.vmem [shape: bf16[2,48,256], index: 0, kind: input, shape index: {}]   ;;  %s583_s1 = inlined_call_operand.vmem [shape: bf16[16,48], index: 1, kind: input, shape index: {}]   ;;  %s584_s2 = inlined_call_operand.vmem [shape: f32[16,1], index: 2, kind: input, shape index: {}]   ;;  %s585_s3 = inlined_call_operand.vmem [shape: f32[16,1], index: 3, kind: input, shape index: {}]   ;;  %s586_s4 = inlined_call_operand.vmem [shape: bf16[2,16,256], index: 4, kind: output, shape index: {}]  }
   0x1 LB: > { %s423_s16 = sadd.s32 4294967295, %s494_s15   ;;  %p427_p0 = scmp.ge.s32.totalorder %s494_s15, 1  ;;  %s494_s15 = sphi %s522_s15, %s14_s15  }
   0x2   : > { %p162_p1 = scmp.lt.s32.totalorder %s494_s15, 3 }
   0x4   : > { %p163_p2 = pnand %p427_p0, %p162_p1 }
   0x5   : > { %p188_p3 = scmp.lt.s32.totalorder (!%p163_p2), %s423_s16, 1 }
   0x6   : > { %166 = sbr.rel (%p163_p2) target bundleno = 438 (0x1b6), region = 36 }
   0xb   : > { %s588_s16 = smov (!%p188_p3, %s423_s16), 1  ;;  %v464_v18 = vld [vmem:[%s583_s1] sm:$0xff]  ;;  %vm242_vm0 = vcmask 392192   ;;  %v496_v31 = vmov 0  }
   0xc   : > { %s471_s17 = smul.u32 48, %s588_s16  ;;  %481 = vset.pattern.permute.xlu2 %v496_v31  ;;  %482 = vset.pattern.permute.xlu0 %v496_v31  ;;  %v300_v55 = vld [vmem:[%s584_s2] sm:$0xff]  ;;  %s463_s5 = sshll.u32 %s588_s16, 4 }
   0xd   : > { %483 = vset.pattern.permute.xlu1 %v496_v31  ;;  %v326_v61 = vld [vmem:[%s585_s3] sm:$0xff]  ;;  %s197_s8 = scalar_lea.vmem %s586_s4, %s463_s5 }
   0xe   : > { %s192_s20 = scalar_lea.vmem %s582_s0, %s471_s17 }
   0xf   : > { %v453_v0 = vld [vmem:[%s192_s20 + $0x20] sm:$0xf]  ;;  %v470_v1 = vld [vmem:[%s192_s20 + $0x24] sm:$0xf0]  ;;  %v469_v2 = vld [vmem:[%s192_s20 + $0x24] sm:$0xf] }
  0x10   : > { %v454_v3 = vor.u32 %v470_v1, %v453_v0  ;;  %v455_v4 = vld [vmem:[%s192_s20 + $0x28] sm:$0xf0]  ;;  %v445_v5 = vld [vmem:[%s192_s20 + $0x10] sm:$0xf]  ;;  %v468_v6 = vld [vmem:[%s192_s20 + $0x14] sm:$0xf0] }
  0x11   : > { %v458_v7 = vor.u32 %v469_v2, %v455_v4  ;;  %v467_v8 = vld [vmem:[%s192_s20 + $0x14] sm:$0xf]  ;;  %v447_v9 = vld [vmem:[%s192_s20 + $0x18] sm:$0xf0]  ;;  %v446_v10 = vor.u32 %v468_v6, %v445_v5  ;;  %v437_v12 = vld [vmem:[%s192_s20] sm:$0xf] }
  0x12   : > { %251 = vmatpush.bf16.msra.mxu0 %v454_v3  ;;  %v450_v11 = vor.u32 %v467_v8, %v447_v9  ;;  %v466_v13 = vld [vmem:[%s192_s20 + $0x4] sm:$0xf0]  ;;  %v465_v14 = vld [vmem:[%s192_s20 + $0x4] sm:$0xf]  ;;  %v439_v15 = vld [vmem:[%s192_s20 + $0x8] sm:$0xf0] }
  0x13   : > { %265 = vmatpush.bf16.msra.mxu1 %v458_v7  ;;  %v438_v16 = vor.u32 %v466_v13, %v437_v12  ;;  %v442_v17 = vor.u32 %v465_v14, %v439_v15  ;;  %v301_v1 = vld [vmem:[%s584_s2 + $0x8] sm:$0xff] }
  0x14   : > { %v327_v5 = vld [vmem:[%s585_s3 + $0x8] sm:$0xff] }
  0x16   : > { %252 = vmatpush.bf16.msra.mxu0 %v446_v10 }
  0x17   : > { %266 = vmatpush.bf16.msra.mxu1 %v450_v11 }
  0x1a   : > { %253 = vmatpush.bf16.msra.mxu0 %v438_v16 }
  0x1b   : > { %267 = vmatpush.bf16.msra.mxu1 %v442_v17 }
  0x1d   : > { %459 = vmatmul.msk.bf16.vlgmr.msra.gmra.mxu0 %vm242_vm0, %v464_v18 }
  0x1e   : > { %460 = vmatmul.msk.bf16.vlgmr.msra.gmra.mxu1 %vm242_vm0, %v464_v18 }
  0x9a   : > { %v539_v19 = vpop.f32.mrf.mxu0 }
  0x9b   : > { %v541_v20 = vpop.f32.mrf.mxu1  ;;  %v280_v21 = vmul.f32 %v539_v19, %v539_v19 }
  0x9c   : > { %v274_v22 = vadd.f32 %v541_v20, %v539_v19  ;;  %v281_v23 = vmul.f32 %v541_v20, %v541_v20 }
  0x9e   : > { %275 = vadd.xlane.f32.xlu0 %v274_v22  ;;  %v284_v24 = vadd.f32 %v281_v23, %v280_v21 }
  0xa0   : > { %285 = vadd.xlane.f32.xlu1 %v284_v24 }
  0xa2   : > { %v549_v25 = vpop.f32.mrf.mxu0 }
  0xa3   : > { %v282_v26 = vmul.f32 %v549_v25, %v549_v25  ;;  %v553_v27 = vpop.f32.mrf.mxu1 }
  0xa4   : > { %v283_v28 = vmul.f32 %v553_v27, %v553_v27  ;;  %v277_v29 = vadd.f32 %v553_v27, %v549_v25 }
  0xa6   : > { %278 = vadd.xlane.f32.xlu0 %v277_v29  ;;  %v287_v30 = vadd.f32 %v283_v28, %v282_v26 }
  0xa8   : > { %288 = vadd.xlane.f32.xlu1 %v287_v30 }
 0x111   : > { %v276_v32 = vpop.xlane.xlu0 %275 }
 0x112   : > { %v290_v33 = vmul.f32 0.00390625, %v276_v32 }
 0x113   : > { %v286_v34 = vpop.xlane.xlu1 %285 }
 0x114   : > { %v294_v35 = vmul.f32 %v290_v33, %v290_v33  ;;  %v292_v36 = vmul.f32 0.00390625, %v286_v34 }
 0x116   : > { %v296_v37 = vsub.f32 %v292_v36, %v294_v35 }
 0x118   : > { %v298_v38 = vmax.f32 %v296_v37, 0.0 }
 0x119   : > { %v279_v39 = vpop.xlane.xlu0 %278 }
 0x11a   : > { %v302_v40 = vadd.f32 1e-05, %v298_v38  ;;  %v291_v41 = vmul.f32 0.00390625, %v279_v39 }
 0x11b   : > { %v289_v42 = vpop.xlane.xlu1 %288 }
 0x11c   : > { %484 = vrsqrt.f32 %v302_v40  ;;  %v295_v43 = vmul.f32 %v291_v41, %v291_v41  ;;  %v293_v44 = vmul.f32 0.00390625, %v289_v42  ;;  %vm310_vm2 = vweird.f32 %v302_v40 }
 0x11e   : > { %v297_v45 = vsub.f32 %v293_v44, %v295_v43 }
 0x120   : > { %v299_v46 = vmax.f32 %v297_v45, 0.0 }
 0x122   : > { %v485_v47 = vpop.eup %484  ;;  %v303_v48 = vadd.f32 1e-05, %v299_v46 }
 0x123   : > { %v305_v49 = vmul.f32 %v485_v47, %v302_v40  ;;  %vm311_vm1 = vweird.f32 %v485_v47 }
 0x124   : > { %486 = vrsqrt.f32 %v303_v48  ;;  %vm312_vm3 = vmor %vm310_vm2, %vm311_vm1  ;;  %vm320_vm5 = vweird.f32 %v303_v48 }
 0x125   : > { %v306_v50 = vmul.f32 %v485_v47, %v305_v49 }
 0x127   : > { %v307_v51 = vmul.f32 0.5, %v306_v50 }
 0x129   : > { %v308_v52 = vsub.f32 1.5, %v307_v51 }
 0x12a   : > { %v487_v53 = vpop.eup %486 }
 0x12b   : > { %v315_v54 = vmul.f32 %v487_v53, %v303_v48  ;;  %v309_v56 = vmul.f32 %v485_v47, %v308_v52  ;;  %vm321_vm4 = vweird.f32 %v487_v53 }
 0x12c   : > { %vm322_vm6 = vmor %vm320_vm5, %vm321_vm4 }
 0x12d   : > { %v316_v57 = vmul.f32 %v487_v53, %v315_v54  ;;  %v313_v58 = vsel %vm312_vm3, %v485_v47, %v309_v56 }
 0x12e   : > { %v324_v59 = vmul.f32 %v313_v58, %v300_v55 }
 0x12f   : > { %v317_v60 = vmul.f32 0.5, %v316_v57 }
 0x130   : > { %334 = vperm.xlu2 %481, %v324_v59   ;;  %v328_v62 = vmul.f32 %v324_v59, %v290_v33 }
 0x131   : > { %v318_v63 = vsub.f32 1.5, %v317_v60 }
 0x132   : > { %v330_v0 = vsub.f32 %v326_v61, %v328_v62 }
 0x133   : > { %v319_v2 = vmul.f32 %v487_v53, %v318_v63 }
 0x134   : > { %348 = vperm.xlu0 %482, %v330_v0  }
 0x135   : > { %v323_v3 = vsel %vm322_vm6, %v487_v53, %v319_v2 }
 0x136   : > { %v325_v4 = vmul.f32 %v323_v3, %v301_v1 }
 0x138   : > { %339 = vperm.xlu2 %481, %v325_v4   ;;  %v329_v6 = vmul.f32 %v325_v4, %v291_v41 }
 0x13a   : > { %v331_v7 = vsub.f32 %v327_v5, %v329_v6 }
 0x13c   : > { %353 = vperm.xlu1 %483, %v331_v7  }
 0x18a   : > { %v335_v8 = vpop.permute.xlu2 %334 }
 0x18b   : > { %v342_v9 = vmul.f32 %v335_v8, %v539_v19  ;;  %v343_v10 = vmul.f32 %v335_v8, %v541_v20 }
 0x192   : > { %v340_v16 = vpop.permute.xlu2 %339 }
 0x193   : > { %v344_v18 = vmul.f32 %v340_v16, %v549_v25  ;;  %v345_v21 = vmul.f32 %v340_v16, %v553_v27 }
 0x1a6   : > { %v349_v11 = vpop.permute.xlu0 %348 }
 0x1a7   : > { %v356_v12 = vadd.f32 %v349_v11, %v342_v9  ;;  %v357_v13 = vadd.f32 %v349_v11, %v343_v10 }
 0x1a9   : > { %v360_v14 = vmax.f32 %v356_v12, 0.0  ;;  %v361_v15 = vmax.f32 %v357_v13, 0.0 }
 0x1ab   : > { %v364_v17 = vpack.c.bf16 %v361_v15, %v360_v14 }
 0x1ad   : > { %366 = vst [vmem:[%s197_s8] sm:$0xff] %v364_v17 }
 0x1ae   : > { %v354_v19 = vpop.permute.xlu1 %353 }
 0x1af   : > { %v358_v22 = vadd.f32 %v354_v19, %v344_v18  ;;  %v359_v20 = vadd.f32 %v354_v19, %v345_v21 }
 0x1b1   : > { %v362_v23 = vmax.f32 %v358_v22, 0.0  ;;  %v363_v24 = vmax.f32 %v359_v20, 0.0 }
 0x1b3   : > { %v365_v26 = vpack.c.bf16 %v363_v24, %v362_v23 }
 0x1b5   : > { %367 = vst [vmem:[%s197_s8 + $0x8] sm:$0xff] %v365_v26 }
 0x1b6 PF: > { %s14_s15 = sadd.s32 1, %s494_s15  }
 0x1b7   : > { %p11_p4 = scmp.ge.s32.totalorder %s14_s15, 4  }
 0x1b9   :  { %13 = sbr.rel (!%p11_p4) target bundleno = 1 (0x1), region = 66 }

</bundles_post_ra>
